<compile_context>
chip_gen: v6e
topology: v6e:2x2x1
jax: 0.10.0
libtpu: 0.0.40
codegen_flags: <defaults>
</compile_context>

<pallas_src>
import functools
import math

import jax
import jax.numpy as jnp
from jax import lax
from jax.experimental import pallas as pl
from jax.experimental.pallas import tpu as pltpu


# ----------------------------- tuning knobs ---------------------------------
_DMA_TARGET_BYTES = 8 * 1024 * 1024   # per-DMA granularity for HBM->HBM copies
_DMA_SLOTS = 4                        # max DMAs in flight per core
_VMEM_BLOCK_BYTES = 8 * 1024 * 1024   # single-buffer budget for the narrow-W path
_MIN_RUN_BYTES = 512                  # below this, strided HBM reads get slow


def _normalize(v):
    return tuple(v) if isinstance(v, (list, tuple)) else (v, v)


def _cdiv(a, b):
    return -(-a // b)


def _round_up(x, m):
    return _cdiv(x, m) * m


def _sublane(itemsize):
    # sublane packing factor: f32 -> 8, bf16 -> 16, int8/fp8 -> 32
    return max(8, 32 // itemsize)


# --------------------- path A: direct HBM->HBM DMA crop ---------------------
def _dma_crop_kernel(x_hbm, o_hbm, sem, *, rows, r_blk, bps, n_slots, window):
    """Copy cropped windows HBM->HBM with up to `n_slots` DMAs in flight.

    Each grid step handles `bps` row-blocks of `r_blk` channel-planes each.
    `window` is a tuple of (offset, size) static slices for the trailing dims
    of the input; the output keeps its full trailing extent.
    """
    step = pl.program_id(0)

    def views(r0):
        src_idx = (pl.ds(r0, r_blk),) + tuple(pl.ds(off, sz) for off, sz in window)
        return x_hbm.at[src_idx], o_hbm.at[pl.ds(r0, r_blk)]

    def row_start(b):
        # Clamp the tail (partial / padded) blocks back into range.  Clamped
        # blocks overlap earlier ones but rewrite identical bytes (pure copy),
        # so correctness is unaffected.
        return jnp.minimum(b * r_blk, rows - r_blk)

    def start(j, slot):
        src, dst = views(row_start(step * bps + j))
        pltpu.make_async_copy(src, dst, sem.at[slot]).start()

    def wait(slot):
        # Wait only needs a descriptor of matching shape; use block 0.
        src, dst = views(0)
        pltpu.make_async_copy(src, dst, sem.at[slot]).wait()

    # Prologue: fill the pipeline.
    for j in range(n_slots):
        start(j, j)

    # Steady state: retire the oldest copy, immediately issue a new one.
    def body(j, carry):
        slot = j % n_slots
        wait(slot)
        start(j + n_slots, slot)
        return carry

    lax.fori_loop(0, bps - n_slots, body, 0)

    # Epilogue: retire the remaining in-flight copies.
    for j in range(bps - n_slots, bps):
        wait(j % n_slots)


def _dma_crop(x_flat, out_trailing, window, target_bytes):
    rows = x_flat.shape[0]
    itemsize = jnp.dtype(x_flat.dtype).itemsize
    plane_bytes = math.prod(out_trailing) * itemsize

    # Per-DMA block: big enough to amortize issue cost, small enough that the
    # grid has >= 2 steps (both v7x cores) and several DMAs can be in flight.
    r_blk = max(1, min(rows, _cdiv(target_bytes, plane_bytes)))
    if rows >= 2:
        r_blk = min(r_blk, _cdiv(rows, 2))
    nblk = _cdiv(rows, r_blk)
    grid = 2 if nblk >= 2 else 1
    bps = _cdiv(nblk, grid)
    n_slots = max(1, min(_DMA_SLOTS, bps))

    kernel = functools.partial(
        _dma_crop_kernel, rows=rows, r_blk=r_blk, bps=bps,
        n_slots=n_slots, window=tuple(window))

    return pl.pallas_call(
        kernel,
        out_shape=jax.ShapeDtypeStruct((rows,) + tuple(out_trailing), x_flat.dtype),
        grid=(grid,),
        in_specs=[pl.BlockSpec(memory_space=pl.ANY)],
        out_specs=pl.BlockSpec(memory_space=pl.ANY),
        scratch_shapes=[pltpu.SemaphoreType.DMA((n_slots,))],
        compiler_params=pltpu.CompilerParams(
            dimension_semantics=("parallel",)),
    )(x_flat)


# ------------- path B: narrow-W crop via auto-pipelined VMEM ----------------
def _vmem_crop_kernel(x_ref, o_ref, *, pad_top, pad_left, out_h, out_w):
    # Full-width plane was fetched sequentially from HBM; trim H/W on-chip so
    # the HBM writeback of the output block is contiguous.
    o_ref[...] = x_ref[:, pad_top:pad_top + out_h, pad_left:pad_left + out_w]


def _vmem_crop(x3, pad_top, pad_left, out_h, out_w, padded_plane_bytes,
               vmem_block_bytes):
    rows, in_h, in_w = x3.shape
    r = max(1, min(rows, vmem_block_bytes // padded_plane_bytes))
    if rows >= 2:                      # keep >= 2 grid steps for v7x megacore
        r = min(r, _cdiv(rows, 2))
    grid = _cdiv(rows, r)              # non-divisor ok: last block is partial
    vmem_limit = max(32 * 1024 * 1024, 2 * r * padded_plane_bytes + (4 << 20))

    kernel = functools.partial(_vmem_crop_kernel, pad_top=pad_top,
                               pad_left=pad_left, out_h=out_h, out_w=out_w)
    return pl.pallas_call(
        kernel,
        out_shape=jax.ShapeDtypeStruct((rows, out_h, out_w), x3.dtype),
        grid=(grid,),
        in_specs=[pl.BlockSpec((r, in_h, in_w), lambda i: (i, 0, 0))],
        out_specs=pl.BlockSpec((r, out_h, out_w), lambda i: (i, 0, 0)),
        compiler_params=pltpu.CompilerParams(
            dimension_semantics=("parallel",),
            vmem_limit_bytes=vmem_limit),
    )(x3)


# ------------------------------ public wrapper -------------------------------
def conv_transpose2d_same_pad(x, kernel_size, stride, *, allow_xla_fusion=False,
                              dma_target_bytes=_DMA_TARGET_BYTES,
                              vmem_block_bytes=_VMEM_BLOCK_BYTES):
    """Pallas implementation of ConvTranspose2dSamePad.forward (NCHW)."""
    ks = _normalize(kernel_size)
    st = _normalize(stride)
    assert ks[0] >= st[0] and ks[1] >= st[1], (
        f"requires kernel_size >= stride (got kernel={ks}, stride={st})")

    n, c, in_h, in_w = x.shape
    pad_h = ks[0] - st[0]
    pad_w = ks[1] - st[1]
    pad_top, pad_left = pad_h // 2, pad_w // 2
    out_h, out_w = in_h - pad_h, in_w - pad_w
    assert out_h > 0 and out_w > 0, "crop would remove the whole plane"

    # Identity fast path: nothing to crop -> no kernel launch.
    if pad_h == 0 and pad_w == 0:
        return x

    # Best option overall: a standalone crop kernel inherently pays a full extra
    # HBM round trip; when the producer/consumer can fuse a slice, use XLA.
    if allow_xla_fusion:
        return x[:, :, pad_top:pad_top + out_h, pad_left:pad_left + out_w]

    itemsize = jnp.dtype(x.dtype).itemsize
    rows = n * c  # block over flattened N*C planes (handles awkward C)

    if pad_w == 0:
        # H-only crop: the cropped region of each plane is one contiguous chunk;
        # direct HBM->HBM DMA with long sequential runs.
        x2 = x.reshape(rows, in_h * in_w)
        out = _dma_crop(x2, (out_h * in_w,),
                        window=((pad_top * in_w, out_h * in_w),),
                        target_bytes=dma_target_bytes)
        return out.reshape(n, c, out_h, in_w)

    x3 = x.reshape(rows, in_h, in_w)
    sub = _sublane(itemsize)
    padded_plane = (_round_up(in_h, sub) * _round_up(in_w, 128) +
                    _round_up(out_h, sub) * _round_up(out_w, 128)) * itemsize
    narrow_w = out_w * itemsize < _MIN_RUN_BYTES

    if narrow_w and padded_plane <= vmem_block_bytes:
        # Narrow-W: avoid sub-512B strided HBM reads by over-fetching full-width
        # planes sequentially and trimming W on-chip.
        out3 = _vmem_crop(x3, pad_top, pad_left, out_h, out_w,
                          padded_plane, vmem_block_bytes)
    else:
        # Wide W (or plane too large for VMEM): direct HBM->HBM windowed DMA.
        out3 = _dma_crop(x3, (out_h, out_w),
                         window=((pad_top, out_h), (pad_left, out_w)),
                         target_bytes=dma_target_bytes)
    return out3.reshape(n, c, out_h, out_w)


# -------------------------------- reference ----------------------------------
def _reference(x, kernel_size, stride):
    ks = _normalize(kernel_size)
    st = _normalize(stride)
    in_h, in_w = x.shape[2], x.shape[3]
    pad_h = ks[0] - st[0]
    pad_w = ks[1] - st[1]
    pt = pad_h // 2
    pb = pad_h - pt
    plft = pad_w // 2
    pr = pad_w - plft
    return x[:, :, pt:in_h - pb, plft:in_w - pr]


if __name__ == "__main__":
    key = jax.random.PRNGKey(0)
    subkeys = jax.random.split(key, 6)

    def check(xx, kern, strd, **kw):
        out = jax.block_until_ready(conv_transpose2d_same_pad(xx, kern, strd, **kw))
        ref = _reference(xx, kern, strd)
        assert out.shape == ref.shape, (out.shape, ref.shape)
        assert jnp.array_equal(out, ref), ("mismatch", kern, strd, xx.shape)
        return out

    # 1) Primary case: kernel=3, stride=2 (odd pad both dims), narrow-W VMEM path.
    x1 = jax.random.normal(subkeys[0], (2, 4, 16, 16), dtype=jnp.float32)
    check(x1, 3, 2)

    # 2) H-only crop (pad_w == 0): direct HBM->HBM DMA with contiguous runs.
    x2 = jax.random.normal(subkeys[1], (2, 8, 16, 128), dtype=jnp.float32)
    check(x2, (4, 2), (2, 2))

    # 3) Wide W: direct HBM->HBM DMA with an H+W crop window.
    x3 = jax.random.normal(subkeys[2], (2, 4, 16, 256), dtype=jnp.float32)
    check(x3, 3, 2)

    # 4) Many small blocks, non-divisor row count, clamped tail block,
    #    in-flight DMA ring exercised via a small per-DMA target.
    x4 = jax.random.normal(subkeys[3], (3, 9, 32, 160), dtype=jnp.float32)
    check(x4, 3, 2, dma_target_bytes=16 * 1024)

    # 5) Narrow-W path with non-divisor channel blocking (partial last block).
    x5 = jax.random.normal(subkeys[4], (2, 7, 24, 24), dtype=jnp.float32)
    check(x5, 3, 2, vmem_block_bytes=100 * 1024)

    # 6) bf16 input on the narrow-W path (sublane-pack-aware footprint).
    x6 = jax.random.normal(subkeys[5], (2, 4, 16, 16), dtype=jnp.bfloat16)
    check(x6, 3, 2)

    # 7) kernel == stride -> pad == 0 -> identity fast path (no kernel launch).
    out7 = conv_transpose2d_same_pad(x1, 2, 2)
    assert out7 is x1

    print("KERNEL_OK")
</pallas_src>

<mosaic_0001>
module attributes {stable_mosaic.version = 11 : i64} {
  func.func @_vmem_crop_kernel(%arg0: i32, %arg1: memref<4x16x16xf32, #tpu.memory_space<vmem>>, %arg2: memref<4x15x15xf32, #tpu.memory_space<vmem>>) attributes {dimension_semantics = [#tpu.dimension_semantics<parallel>], iteration_bounds = array<i64: 2>, scalar_prefetch = 0 : i64, scratch_operands = 0 : i64, tpu.core_type = #tpu.core_type<tc>, window_params = [{transform_indices = @transform_0, window_bounds = array<i64: 4, 16, 16>}, {transform_indices = @transform_1, window_bounds = array<i64: 4, 15, 15>}]} {
    %c0 = arith.constant 0 : index
    %c0_0 = arith.constant 0 : index
    %c0_1 = arith.constant 0 : index
    %0 = vector.load %arg1[%c0, %c0_0, %c0_1] : memref<4x16x16xf32, #tpu.memory_space<vmem>>, vector<4x15x15xf32>
    %c0_2 = arith.constant 0 : index
    %c0_3 = arith.constant 0 : index
    %c0_4 = arith.constant 0 : index
    %1 = vector.load %arg2[%c0_2, %c0_3, %c0_4] : memref<4x15x15xf32, #tpu.memory_space<vmem>>, vector<4x15x15xf32>
    tpu.vector_store %arg2[%c0_2, %c0_3, %c0_4], %0 {strides = array<i32>} : memref<4x15x15xf32, #tpu.memory_space<vmem>>, vector<4x15x15xf32>,
    return
  }
  func.func @transform_0(%arg0: i32) -> (i32, i32, i32) {
    %c0_i32 = arith.constant 0 : i32
    %c0_i32_0 = arith.constant 0 : i32
    %c0_i32_1 = arith.constant 0 : i32
    return %arg0, %c0_i32, %c0_i32_0 : i32, i32, i32
  }
  func.func @transform_1(%arg0: i32) -> (i32, i32, i32) {
    %c0_i32 = arith.constant 0 : i32
    %c0_i32_0 = arith.constant 0 : i32
    %c0_i32_1 = arith.constant 0 : i32
    return %arg0, %c0_i32, %c0_i32_0 : i32, i32, i32
  }
}

</mosaic_0001>

<bundles_post_ra>
// kernel: tpu_custom_call.1
= control target key start
LH: loop header
LB: loop body
LE: loop exit
PB: predicated region body
PF: predicated region fallthrough
CT: control target
= control target key end

     0   :  { %6 = vsyncpa [#allocation3], 0  ;;  %s473_s0 = inlined_call_operand.hbm [shape: f32[8,16,16], index: 0, kind: input, shape index: {}]   ;;  %s474_s1 = inlined_call_operand.vmem [shape: f32[8,15,15], index: 1, kind: output, shape index: {}]  }
   0x1   :  { %8 = vsyncpa [#allocation3 + $0x1], 0  ;;  %s365_s6 = smov 0   ;;  %s367_s7 = smov 0  }
   0x2   :  { %s369_s8 = smov 0   ;;  %s371_s9 = smov 0  }
   0x3 LB: > { %s229_s10 = sadd.s32 4294967295, %s350_s9   ;;  %s385_s11 = sadd.s32 1, %s350_s9   ;;  %s350_s9 = sphi %s371_s9, %s483_s9   ;;  %s346_s8 = sphi %s369_s8, %s482_s8   ;;  %s342_s7 = sphi %s367_s7, %s481_s7   ;;  %s338_s6 = sphi %s365_s6, %s480_s6  }
   0x4   : > { %s18_s12 = ssub.s32 %s350_s9, %s385_s11  ;;  %s21_s13 = sadd.s32 1, %s346_s8 }
   0x5   : > { %p19_p0 = scmp.eq.s32.totalorder %s18_s12, 0  ;;  %p28_p1 = scmp.ne.s32.totalorder %s346_s8, %s342_s7 }
   0x6   : > { %p29_p2 = scmp.eq.s32.totalorder %s350_s9, 0  ;;  %p34_p3 = scmp.ne.s32.totalorder %s342_s7, %s338_s6 }
   0x7   : > { %s395_s14 = scalar_select %p19_p0, %s346_s8, %s21_s13  }
   0x8   : > { %p30_p4 = por %p29_p2, %p28_p1  ;;  %p35_p5 = scmp.eq.s32.totalorder %s229_s10, 0 }
   0x9   : > { %p253_p6 = scmp.lt.s32.totalorder %s350_s9, 2  ;;  %s84_s16 = sand.u32 1, %s346_s8  }
   0xa   : > { %p400_p7 = por %p35_p5, %p34_p3  ;;  %s233_s17 = sshll.u32 %s84_s16, 6 }
   0xb   : > { %s245_s18 = sshll.u32 %s350_s9, 10  ;;  %s88_s22 = scalar_lea.vmem [#allocation2], %s233_s17 }
   0xc   : > { %s476_s15 = scalar_select %p400_p7, 1, 0 }
   0xd   : > { %s409_s21 = scalar_lea.hbm %s473_s0, %s245_s18  ;;  %s96_s23 = sshll.u32 %s88_s22, 4  ;;  %s411_s23 = int_to_ptr.vmem [resolvable:$true] %s96_s23 }
   0xe   : > { %p413_p8 = pnand %p253_p6, %p30_p4  ;;  %s418_s25 = scalar_lea.sflag [#allocation3], %s84_s16 }
   0xf   : > { %s288_s26 = scalar_lea.hbm %s409_s21, 1024  ;;  %s293_s29 = scalar_lea.hbm %s473_s0, 2048 }
  0x10   : > { %p289_p10 = scmp.ne.s32.totalorder %s409_s21, %s288_s26  ;;  %p290_p11 = pneg %p413_p8 }
  0x11   : > { %p294_p0 = scmp.lt.s32.totalorder %s409_s21, %s473_s0  ;;  %p295_p1 = scmp.lt.s32.totalorder %s293_s29, %s288_s26 }
  0x12   : > { %p291_p12 = pnand %p290_p11, %p289_p10 }
  0x13   : > { %p296_p2 = por %p295_p1, %p294_p0 }
  0x14   : > { %p292_p13 = pneg %p291_p12 }
  0x16   : > { %p297_p3 = pnand %p296_p2, %p292_p13 }
  0x18   : > { %300 = shalt.err (!%p297_p3)
}
  0x19   : > { %s301_s3 = scalar_lea.vmem %s411_s23, 1024  ;;  %s352_s4 = smov [#allocation2]  }
  0x1a   : > { %p302_p4 = scmp.ne.s32.totalorder %s411_s23, %s301_s3  ;;  %s306_s5 = sshll.u32 %s352_s4, 4  ;;  %s307_s5 = int_to_ptr.vmem [resolvable:$false] %s306_s5 }
  0x1b   : > { %s308_s6 = scalar_lea.vmem %s307_s5, 2048  ;;  %p309_p10 = scmp.lt.s32.totalorder %s411_s23, %s307_s5 }
  0x1c   : > { %p304_p5 = pnand %p302_p4, %p290_p11  ;;  %p310_p12 = scmp.lt.s32.totalorder %s308_s6, %s301_s3 }
  0x1e   : > { %p305_p6 = pneg %p304_p5  ;;  %p311_p9 = por %p310_p12, %p309_p10 }
  0x20   : > { %p312_p7 = pnand %p311_p9, %p305_p6 }
  0x22   : > { %315 = shalt.err (!%p312_p7)
}
  0x23   : > { %s353_s12 = smov 128   ;;  %s354_s13 = smov 8  }
  0x24   : > { %252 = dma.hbm_to_vmem [thread:$0]  (!%p413_p8), %s409_s21, 1024, %s411_s23, %s418_s25, %s353_s12, %s353_s12, %s354_s13  }
  0x25   : > { %p104_p11 = scmp.lt.s32.totalorder %s350_s9, 3  ;;  %p478_p13 = scmp.ge.s32.totalorder %s350_s9, 1 }
  0x27   : > { %p105_p0 = pnand %p478_p13, %p104_p11 }
  0x28   : > { %s110_s16 = sand.u32 (!%p105_p0), 1, %s342_s7   ;;  %p479_p7 = scmp.ne.s32.totalorder (!%p105_p0), %s476_s15, 0 }
  0x29   : > { %108 = sbr.rel (%p105_p0) target bundleno = 57 (0x39), region = 24  ;;  %s238_s17 = sshll.u32 (!%p105_p0), %s110_s16, 6 }
  0x2a   : > { %s111_s18 = scalar_lea.sflag (!%p105_p0), [#allocation3], %s110_s16  ;;  %s114_s19 = scalar_lea.vmem (!%p105_p0), [#allocation2], %s238_s17 }
  0x2e   : > { %333 = dma.done.wait (%p479_p7), %s111_s18, 1024  }
  0x2f   : > { %335 = vsyncadd (%p479_p7), %s111_s18, 4294966272  ;;  %s239_s20 = sshll.u32 %s229_s10, 2  ;;  %vm150_vm0 = vcmask 121856   ;;  %vm152_vm1 = vcmask 120832   ;;  %v142_v0 = vld [vmem:[%s114_s19] sm:$0xff]  ;;  %v144_v2 = vld [vmem:[%s114_s19 + $0x10] sm:$0xff] }
  0x30   : > { %p136_p9 = scmp.lt.s32.totalorder %s239_s20, 7  ;;  %v143_v1 = vld [vmem:[%s114_s19 + $0x8] sm:$0x7f]  ;;  %v145_v3 = vld [vmem:[%s114_s19 + $0x18] sm:$0x7f]  ;;  %v146_v4 = vld [vmem:[%s114_s19 + $0x20] sm:$0xff] }
  0x31   : > { %v147_v5 = vld [vmem:[%s114_s19 + $0x28] sm:$0x7f]  ;;  %v148_v6 = vld [vmem:[%s114_s19 + $0x30] sm:$0xff]  ;;  %v149_v7 = vld [vmem:[%s114_s19 + $0x38] sm:$0x7f] }
  0x32   : > { %s485_s20 = smov (!%p136_p9, %s239_s20), 7 }
  0x33   : > { %s246_s21 = sshll.u32 %s485_s20, 4 }
  0x34   : > { %s140_s24 = scalar_lea.vmem %s474_s1, %s246_s21 }
  0x35   : > { %151 = vst.msk [vmem:[%s140_s24] sm:$0xff] %vm150_vm0, %v142_v0  ;;  %154 = vst.msk [vmem:[%s140_s24 + $0x10] sm:$0xff] %vm150_vm0, %v144_v2 }
  0x36   : > { %153 = vst.msk [vmem:[%s140_s24 + $0x8] sm:$0x7f] %vm152_vm1, %v143_v1  ;;  %155 = vst.msk [vmem:[%s140_s24 + $0x18] sm:$0x7f] %vm152_vm1, %v145_v3 }
  0x37   : > { %156 = vst.msk [vmem:[%s140_s24 + $0x20] sm:$0xff] %vm150_vm0, %v146_v4  ;;  %158 = vst.msk [vmem:[%s140_s24 + $0x30] sm:$0xff] %vm150_vm0, %v148_v6 }
  0x38   : > { %157 = vst.msk [vmem:[%s140_s24 + $0x28] sm:$0x7f] %vm152_vm1, %v147_v5  ;;  %159 = vst.msk [vmem:[%s140_s24 + $0x38] sm:$0x7f] %vm152_vm1, %v149_v7 }
  0x39 PF: > { %p11_p8 = scmp.ge.s32.totalorder %s385_s11, 4   ;;  %s480_s6 = smov %s342_s7 }
  0x3a   : > { %s481_s7 = smov %s346_s8  ;;  %s482_s8 = smov %s395_s14 }
  0x3b   : > { %s483_s9 = smov %s385_s11  ;;  %13 = sbr.rel (!%p11_p8) target bundleno = 3 (0x3), region = 64 }
  0x40   :  { %184 = vsyncpa [#allocation3], 1 }
  0x41   :  { %186 = vsyncpa [#allocation3 + $0x1], 1 }

</bundles_post_ra>
